<compile_context>
chip_gen: v7x
topology: tpu7x:2x2x1
jax: 0.10.0
libtpu: 0.0.40
codegen_flags: <defaults>
</compile_context>

<pallas_src>
import functools

import numpy as np
import jax
import jax.numpy as jnp
from jax.experimental import pallas as pl
from jax.experimental.pallas import tpu as pltpu


def _ctc_argmax_kernel(e_ref, idx_ref):
    """Argmax over the label (sublane) axis for one time tile.

    e_ref:   (L, tile_t) emission logits — labels on sublanes, time on lanes.
    idx_ref: (1, tile_t) int32 argmax label per frame (first-maximal-index
             tie-break, matching jnp.argmax / torch.argmax).
    """
    x = e_ref[...].astype(jnp.float32)                 # upcast (bf16 inputs OK)
    L = x.shape[0]

    # NaN guard: torch.argmax treats NaN as maximal; map NaN -> +inf.  (If a frame
    # holds a genuine +inf at a lower label index than its first NaN we return the
    # +inf label instead of the NaN label — harmless for real logits.)
    x = jnp.where(jnp.isnan(x), jnp.inf, x)

    # Max over labels: L/8 cross-vreg VPU maxes + one small sublane tree (XLU).
    mx = jnp.max(x, axis=0, keepdims=True)             # (1, tile_t)

    # First-maximal-index argmax via sentinel-min (float reduce; values are small
    # integers so the f32 round-trip is exact).
    row = jax.lax.broadcasted_iota(jnp.int32, x.shape, dimension=0).astype(jnp.float32)
    cand = jnp.where(x == mx, row, jnp.float32(L))     # VPU compare/select
    idx_ref[...] = jnp.min(cand, axis=0, keepdims=True).astype(jnp.int32)


def _round_up(x: int, m: int) -> int:
    return ((x + m - 1) // m) * m


@functools.partial(jax.jit, static_argnames=("tile_t",))
def ctc_greedy_indices(emission: jax.Array, *, tile_t: int = 8192) -> jax.Array:
    """emission: (T, L) float -> (T,) int32 per-frame argmax indices."""
    T, L = emission.shape
    itemsize = jnp.dtype(emission.dtype).itemsize

    # Time tile (lane axis): multiple of 128, capped by the lane-rounded sequence
    # length and by a ~4 MiB per-pipeline-buffer VMEM budget (2 buffers/stream is
    # far inside the 32 MiB scoped VMEM on v5e/v6e/v7x).
    budget_cols = max(128, ((4 * 1024 * 1024) // max(L * itemsize, 1) // 128) * 128)
    tile = max(128, min(_round_up(tile_t, 128), _round_up(T, 128), budget_cols))
    grid = (pl.cdiv(T, tile),)

    # One wrapper-side layout pass: put time on the lane axis, labels on sublanes.
    em_t = emission.T                                   # (L, T)

    idx = pl.pallas_call(
        _ctc_argmax_kernel,
        grid=grid,
        in_specs=[pl.BlockSpec((L, tile), lambda i: (0, i))],
        out_specs=pl.BlockSpec((1, tile), lambda i: (0, i)),   # lane-dense output
        out_shape=jax.ShapeDtypeStruct((1, T), jnp.int32),
        compiler_params=pltpu.CompilerParams(
            # No cross-tile carry -> the time axis is truly parallel (v7x 2-TC split);
            # a measured no-op on single-TC v5e/v6e but never harmful.
            dimension_semantics=("parallel",),
        ),
        cost_estimate=pl.CostEstimate(
            flops=3 * T * L,
            transcendentals=0,
            bytes_accessed=T * L * itemsize + T * 4,
        ),
    )(em_t)

    return idx[0, :T]


class GreedyCTCDecoder:
    """JAX/Pallas port of the PyTorch GreedyCTCDecoder."""

    def __init__(self, labels, ignore):
        self.labels = labels
        self.ignore = set(int(i) for i in ignore)

    def __call__(self, emission: jax.Array) -> str:
        idx = ctc_greedy_indices(emission)
        # Single device->host transfer, then a pure NumPy/Python epilogue.
        idx = np.asarray(jax.device_get(idx))
        if idx.size:
            keep = np.empty(idx.shape, dtype=bool)      # unique_consecutive mask
            keep[0] = True
            keep[1:] = idx[1:] != idx[:-1]
            idx = idx[keep]
        # TODO(synk): ignore-filter + label string join are data-dependent-length
        # host-side string ops with no Pallas equivalent.
        return "".join(self.labels[int(i)] for i in idx if int(i) not in self.ignore)


if __name__ == "__main__":
    T, L = 1024, 32                                     # num_seq x num_label
    labels = "-abcdefghijklmnopqrstuvwxyz .,'?"         # 32 labels, index 0 = CTC blank
    assert len(labels) == L
    ignore = (0,)

    key = jax.random.PRNGKey(0)
    emission = jax.random.normal(key, (T, L), dtype=jnp.float32)

    # Default path: single lane-dense block (T <= tile), one grid step.
    idx = ctc_greedy_indices(emission)
    jax.block_until_ready(idx)

    # Multi-tile pipelined path (4 grid steps) must agree with the single-block path.
    idx_tiled = ctc_greedy_indices(emission, tile_t=256)
    jax.block_until_ready(idx_tiled)

    # Correctness: argmax vs plain XLA.
    ref_idx = jnp.argmax(emission, axis=-1).astype(jnp.int32)
    assert jnp.array_equal(idx, ref_idx), "argmax mismatch vs jnp.argmax"
    assert jnp.array_equal(idx_tiled, ref_idx), "tiled argmax mismatch vs jnp.argmax"

    # Full decode (kernel + host epilogue) vs a NumPy reference decode.
    decoder = GreedyCTCDecoder(labels, ignore)
    transcript = decoder(emission)

    ref = np.asarray(ref_idx)
    ref_keep = np.concatenate([[True], ref[1:] != ref[:-1]])
    ref_transcript = "".join(labels[i] for i in ref[ref_keep] if i not in set(ignore))
    assert transcript == ref_transcript, "transcript mismatch vs reference decode"

    print("KERNEL_OK")
</pallas_src>

<mosaic_0001>
module attributes {stable_mosaic.version = 11 : i64} {
  func.func @_ctc_argmax_kernel(%arg0: i32, %arg1: memref<32x1024xf32, #tpu.memory_space<vmem>>, %arg2: memref<1x1024xi32, #tpu.memory_space<vmem>>) attributes {dimension_semantics = [#tpu.dimension_semantics<parallel>], iteration_bounds = array<i64: 1>, scalar_prefetch = 0 : i64, scratch_operands = 0 : i64, tpu.core_type = #tpu.core_type<tc>, window_params = [{transform_indices = @transform_0, window_bounds = array<i64: 32, 1024>}, {transform_indices = @transform_1, window_bounds = array<i64: 1, 1024>}]} {
    %c0 = arith.constant 0 : index
    %c0_0 = arith.constant 0 : index
    %0 = vector.load %arg1[%c0, %c0_0] : memref<32x1024xf32, #tpu.memory_space<vmem>>, vector<32x1024xf32>
    %1 = arith.cmpf one, %0, %0 : vector<32x1024xf32>
    %cst = arith.constant 0x7F800000 : f32
    %2 = vector.broadcast %cst : f32 to vector<32x1024xf32>
    %3 = arith.select %1, %2, %0 : vector<32x1024xi1>, vector<32x1024xf32>
    %cst_1 = arith.constant dense<0xFF800000> : vector<1024xf32>
    %4 = vector.multi_reduction <maximumf>, %3, %cst_1 [0] : vector<32x1024xf32> to vector<1024xf32>
    %5 = vector.shape_cast %4 : vector<1024xf32> to vector<1x1024xf32>
    %6 = tpu.iota {dimensions = array<i32: 0>} : vector<32x1024xi32>
    %7 = arith.sitofp %6 : vector<32x1024xi32> to vector<32x1024xf32>
    %8 = vector.broadcast %5 : vector<1x1024xf32> to vector<32x1024xf32>
    %9 = arith.cmpf oeq, %3, %8 : vector<32x1024xf32>
    %cst_2 = arith.constant 3.200000e+01 : f32
    %10 = vector.broadcast %cst_2 : f32 to vector<32x1024xf32>
    %11 = arith.select %9, %7, %10 : vector<32x1024xi1>, vector<32x1024xf32>
    %cst_3 = arith.constant dense<0x7F800000> : vector<1024xf32>
    %12 = vector.multi_reduction <minimumf>, %11, %cst_3 [0] : vector<32x1024xf32> to vector<1024xf32>
    %13 = vector.shape_cast %12 : vector<1024xf32> to vector<1x1024xf32>
    %14 = arith.fptosi %13 : vector<1x1024xf32> to vector<1x1024xi32>
    %c0_4 = arith.constant 0 : index
    %c0_5 = arith.constant 0 : index
    %15 = vector.load %arg2[%c0_4, %c0_5] : memref<1x1024xi32, #tpu.memory_space<vmem>>, vector<1x1024xi32>
    tpu.vector_store %arg2[%c0_4, %c0_5], %14 {strides = array<i32>} : memref<1x1024xi32, #tpu.memory_space<vmem>>, vector<1x1024xi32>,
    return
  }
  func.func @transform_0(%arg0: i32) -> (i32, i32) {
    %c0_i32 = arith.constant 0 : i32
    %c0_i32_0 = arith.constant 0 : i32
    return %c0_i32, %arg0 : i32, i32
  }
  func.func @transform_1(%arg0: i32) -> (i32, i32) {
    %c0_i32 = arith.constant 0 : i32
    %c0_i32_0 = arith.constant 0 : i32
    return %c0_i32, %arg0 : i32, i32
  }
}

</mosaic_0001>

<bundles_post_ra>
// kernel: ctc_greedy_indices.1
= control target key start
LH: loop header
LB: loop body
LE: loop exit
PB: predicated region body
PF: predicated region fallthrough
CT: control target
= control target key end

     0   :  { %6 = vsyncpa [#allocation3], 0  ;;  %s868_s0 = inlined_call_operand.hbm [shape: f32[32,1024], index: 0, kind: input, shape index: {}]   ;;  %s869_s1 = inlined_call_operand.hbm [shape: s32[1,1024], index: 1, kind: output, shape index: {}]  }
   0x1   :  { %7 = vsyncpa [#allocation4], 0  ;;  %s478_s6 = smov [#allocation2]   ;;  %s430_s10 = scalar_lea.hbm %s868_s0, 4096 }
   0x2   :  { %s13_s7 = sshll.u32 %s478_s6, 4  ;;  %p431_p0 = scmp.ne.s32.totalorder %s868_s0, %s430_s10  ;;  %s14_s7 = int_to_ptr.vmem [resolvable:$true] %s13_s7 }
   0x3   :  { %p434_p1 = scmp.lt.u32.totalorder %s430_s10, %s868_s0 }
   0x5   :  { %p436_p2 = pnand %p434_p1, %p431_p0 }
   0x7   :  { %439 = shalt.err (!%p436_p2)
}
   0x8   :  { %s440_s15 = scalar_lea.vmem %s14_s7, 4096  ;;  %p445_p4 = scmp.lt.s32.totalorder %s14_s7, %s14_s7 }
   0x9   :  { %p441_p3 = scmp.ne.s32.totalorder %s14_s7, %s440_s15  ;;  %p446_p5 = scmp.lt.s32.totalorder %s440_s15, %s440_s15 }
   0xb   :  { %p447_p6 = por %p446_p5, %p445_p4 }
   0xd   :  { %p448_p7 = pnand %p447_p6, %p441_p3 }
   0xf   :  { %451 = shalt.err (!%p448_p7)
}
  0x10   :  { %s479_s16 = smov 1024   ;;  %s480_s17 = smov 64  }
  0x11   :  { %19 = dma.hbm_to_vmem [thread:$0]  %s868_s0, 4096, %s14_s7, [#allocation3], %s479_s16, %s479_s16, %s480_s17  }
  0x12   :  { %474 = dma.done.wait [#allocation3], 4096  }
  0x13   :  { %475 = vsyncadd [#allocation3], 4294963200  ;;  %v191_v0 = vlaneseq  ;;  %v481_v1 = vmov 1966171168   ;;  %v23_v8 = vld [vmem:[#allocation2] sm:$0xff]  ;;  %v24_v9 = vld [vmem:[#allocation2 + $0x8] sm:$0xff] }
  0x14   :  { %v349_v2 = vunpack.c.l.s4 %v481_v1  ;;  %v25_v10 = vld [vmem:[#allocation2 + $0x10] sm:$0xff]  ;;  %v26_v15 = vld [vmem:[#allocation2 + $0x18] sm:$0xff]  ;;  %v27_v16 = vld [vmem:[#allocation2 + $0x20] sm:$0xff]  ;;  %vm55_vm0 = vcmp.ne.f32.partialorder %v23_v8, %v23_v8  ;;  %vm56_vm1 = vcmp.ne.f32.partialorder %v24_v9, %v24_v9  ;;  %s482_s0 = smov [#allocation5]  }
  0x15   :  { %v192_v3 = vshrl.u32 %v191_v0, 7  ;;  %v28_v17 = vld [vmem:[#allocation2 + $0x28] sm:$0xff]  ;;  %vm57_vm2 = vcmp.ne.f32.partialorder %v25_v10, %v25_v10  ;;  %v29_v19 = vld [vmem:[#allocation2 + $0x30] sm:$0xff]  ;;  %v30_v20 = vld [vmem:[#allocation2 + $0x38] sm:$0xff]  ;;  %vm58_vm3 = vcmp.ne.f32.partialorder %v26_v15, %v26_v15  ;;  %vm59_vm4 = vcmp.ne.f32.partialorder %v27_v16, %v27_v16  ;;  %s400_s20 = sshll.u32 %s482_s0, 4  ;;  %s401_s20 = int_to_ptr.vmem [resolvable:$true] %s400_s20 }
  0x16   :  { %v350_v4 = vunpack.c.0.s8 %v349_v2  ;;  %v31_v21 = vld [vmem:[#allocation2 + $0x40] sm:$0xff]  ;;  %vm60_vm5 = vcmp.ne.f32.partialorder %v28_v17, %v28_v17  ;;  %v515_v22 = vsel %vm55_vm0, inf, %v23_v8  ;;  %v32_v23 = vld [vmem:[#allocation2 + $0x48] sm:$0xff]  ;;  %v33_v24 = vld [vmem:[#allocation2 + $0x50] sm:$0xff]  ;;  %vm61_vm6 = vcmp.ne.f32.partialorder %v29_v19, %v29_v19  ;;  %s452_s21 = scalar_lea.vmem %s401_s20, 128  ;;  %p457_p9 = scmp.lt.s32.totalorder %s401_s20, %s401_s20 }
  0x17   :  { %v193_v5 = vadd.s32 8, %v192_v3  ;;  %v194_v6 = vadd.s32 16, %v192_v3  ;;  %v195_v7 = vadd.s32 24, %v192_v3  ;;  %v505_v11 = vcvt.s32.f32 %v192_v3  ;;  %v34_v25 = vld [vmem:[#allocation2 + $0x58] sm:$0xff]  ;;  %v35_v27 = vld [vmem:[#allocation2 + $0x60] sm:$0xff]  ;;  %v36_v28 = vld [vmem:[#allocation2 + $0x68] sm:$0xff]  ;;  %p453_p8 = scmp.ne.s32.totalorder %s401_s20, %s452_s21  ;;  %p458_p10 = scmp.lt.s32.totalorder %s452_s21, %s452_s21 }
  0x18   :  { %v511_v14 = vsub.s32 %v350_v4, %v192_v3  ;;  %vm62_vm7 = vcmp.ne.f32.partialorder %v30_v20, %v30_v20  ;;  %vm63_vm8 = vcmp.ne.f32.partialorder %v31_v21, %v31_v21  ;;  %v518_v26 = vsel %vm56_vm1, inf, %v24_v9  ;;  %v37_v29 = vld [vmem:[#allocation2 + $0x70] sm:$0xff]  ;;  %v38_v31 = vld [vmem:[#allocation2 + $0x78] sm:$0xff]  ;;  %v39_v32 = vld [vmem:[#allocation2 + $0x80] sm:$0xff] }
  0x19   :  { %881 = vst [vmem:[#allocation8_spill] sm:$0xff] %v505_v11  ;;  %v507_v12 = vcvt.s32.f32 %v193_v5  ;;  %v509_v13 = vcvt.s32.f32 %v194_v6  ;;  %v513_v18 = vcvt.s32.f32 %v195_v7  ;;  %vm64_vm9 = vcmp.ne.f32.partialorder %v32_v23, %v32_v23  ;;  %v40_v33 = vld [vmem:[#allocation2 + $0x88] sm:$0xff]  ;;  %v41_v35 = vld [vmem:[#allocation2 + $0x90] sm:$0xff]  ;;  %v42_v36 = vld [vmem:[#allocation2 + $0x98] sm:$0xff]  ;;  %p459_p11 = por %p458_p10, %p457_p9 }
  0x1a   :  { %884 = vst [vmem:[#allocation11_spill] sm:$0xff] %v511_v14  ;;  %vm65_vm10 = vcmp.ne.f32.partialorder %v33_v24, %v33_v24  ;;  %v521_v30 = vsel %vm57_vm2, inf, %v25_v10  ;;  %vm68_vm13 = vcmp.ne.f32.partialorder %v36_v28, %v36_v28  ;;  %v524_v34 = vsel %vm58_vm3, inf, %v26_v15  ;;  %v43_v37 = vld [vmem:[#allocation2 + $0xa0] sm:$0xff]  ;;  %v44_v39 = vld [vmem:[#allocation2 + $0xa8] sm:$0xff]  ;;  %v45_v40 = vld [vmem:[#allocation2 + $0xb0] sm:$0xff] }
  0x1b   :  { %882 = vst [vmem:[#allocation9_spill] sm:$0xff] %v507_v12  ;;  %883 = vst [vmem:[#allocation10_spill] sm:$0xff] %v509_v13  ;;  %vm71_vm0 = vcmp.ne.f32.partialorder %v39_v32, %v39_v32  ;;  %v527_v38 = vsel %vm59_vm4, inf, %v27_v16  ;;  %v46_v41 = vld [vmem:[#allocation2 + $0xb8] sm:$0xff]  ;;  %v530_v42 = vsel %vm60_vm5, inf, %v28_v17  ;;  %v47_v43 = vld [vmem:[#allocation2 + $0xc0] sm:$0xff]  ;;  %vm76_vm3 = vcmp.ne.f32.partialorder %v44_v39, %v44_v39  ;;  %p460_p12 = pnand %p459_p11, %p453_p8 }
  0x1c   :  { %885 = vst [vmem:[#allocation12_spill] sm:$0xff] %v513_v18  ;;  %v48_v44 = vld [vmem:[#allocation2 + $0xc8] sm:$0xff]  ;;  %v49_v45 = vld [vmem:[#allocation2 + $0xd0] sm:$0xff]  ;;  %vm77_vm14 = vcmp.ne.f32.partialorder %v45_v40, %v45_v40  ;;  %v533_v46 = vsel %vm61_vm6, inf, %v29_v19  ;;  %v50_v47 = vld [vmem:[#allocation2 + $0xd8] sm:$0xff]  ;;  %vm79_vm4 = vcmp.ne.f32.partialorder %v47_v43, %v47_v43  ;;  %v536_v50 = vsel %vm62_vm7, inf, %v30_v20 }
  0x1d   :  { %v51_v48 = vld [vmem:[#allocation2 + $0xe0] sm:$0xff]  ;;  %v52_v49 = vld [vmem:[#allocation2 + $0xe8] sm:$0xff]  ;;  %vm80_vm1 = vcmp.ne.f32.partialorder %v48_v44, %v48_v44  ;;  %v53_v51 = vld [vmem:[#allocation2 + $0xf0] sm:$0xff]  ;;  %vm82_vm5 = vcmp.ne.f32.partialorder %v50_v47, %v50_v47  ;;  %v539_v53 = vsel %vm63_vm8, inf, %v31_v21  ;;  %v542_v54 = vsel %vm64_vm9, inf, %v32_v23 }
  0x1e   :  { %v54_v52 = vld [vmem:[#allocation2 + $0xf8] sm:$0xff]  ;;  %vm83_vm12 = vcmp.ne.f32.partialorder %v51_v48, %v51_v48  ;;  %vm85_vm15 = vcmp.ne.f32.partialorder %v53_v51, %v53_v51  ;;  %v545_v55 = vsel %vm65_vm10, inf, %v33_v24  ;;  %vm886_vm2 = vcmp.ne.f32.partialorder %v34_v25, %v34_v25 }
  0x1f   :  { %vm86_vm6 = vcmp.ne.f32.partialorder %v54_v52, %v54_v52  ;;  %v548_v56 = vsel %vm886_vm2, inf, %v34_v25  ;;  %vm887_vm7 = vcmp.ne.f32.partialorder %v35_v27, %v35_v27  ;;  %v554_v58 = vsel %vm68_vm13, inf, %v36_v28 }
  0x20   :  { %v551_v57 = vsel %vm887_vm7, inf, %v35_v27  ;;  %vm888_vm11 = vcmp.ne.f32.partialorder %v37_v29, %v37_v29  ;;  %vm889_vm8 = vcmp.ne.f32.partialorder %v38_v31, %v38_v31  ;;  %v563_v61 = vsel %vm71_vm0, inf, %v39_v32 }
  0x21   :  { %v557_v59 = vsel %vm888_vm11, inf, %v37_v29  ;;  %v560_v60 = vsel %vm889_vm8, inf, %v38_v31  ;;  %vm890_vm9 = vcmp.ne.f32.partialorder %v40_v33, %v40_v33  ;;  %vm891_vm10 = vcmp.ne.f32.partialorder %v41_v35, %v41_v35 }
  0x22   :  { %v566_v62 = vsel %vm890_vm9, inf, %v40_v33  ;;  %v569_v63 = vsel %vm891_vm10, inf, %v41_v35  ;;  %vm892_vm2 = vcmp.ne.f32.partialorder %v42_v36, %v42_v36  ;;  %vm893_vm13 = vcmp.ne.f32.partialorder %v43_v37, %v43_v37 }
  0x23   :  { %v572_v0 = vsel %vm892_vm2, inf, %v42_v36  ;;  %v575_v1 = vsel %vm893_vm13, inf, %v43_v37  ;;  %v578_v2 = vsel %vm76_vm3, inf, %v44_v39  ;;  %v581_v3 = vsel %vm77_vm14, inf, %v45_v40 }
  0x24   :  { %vm894_vm11 = vcmp.ne.f32.partialorder %v46_v41, %v46_v41  ;;  %v587_v5 = vsel %vm79_vm4, inf, %v47_v43  ;;  %v590_v6 = vsel %vm80_vm1, inf, %v48_v44  ;;  %vm895_vm0 = vcmp.ne.f32.partialorder %v49_v45, %v49_v45 }
  0x25   :  { %v584_v4 = vsel %vm894_vm11, inf, %v46_v41  ;;  %v593_v7 = vsel %vm895_vm0, inf, %v49_v45  ;;  %v596_v8 = vsel %vm82_vm5, inf, %v50_v47  ;;  %v599_v9 = vsel %vm83_vm12, inf, %v51_v48 }
  0x26   :  { %vm896_vm14 = vcmp.ne.f32.partialorder %v52_v49, %v52_v49  ;;  %v605_v15 = vsel %vm85_vm15, inf, %v53_v51  ;;  %v608_v16 = vsel %vm86_vm6, inf, %v54_v52  ;;  %v119_v17 = vmax.f32 %v515_v22, %v539_v53 }
  0x27   :  { %v602_v10 = vsel %vm896_vm14, inf, %v52_v49  ;;  %898 = vst [vmem:[#allocation14_spill] sm:$0xff] %v605_v15  ;;  %899 = vst [vmem:[#allocation15_spill] sm:$0xff] %v608_v16  ;;  %v128_v19 = vmax.f32 %v518_v26, %v542_v54  ;;  %v137_v20 = vmax.f32 %v521_v30, %v545_v55  ;;  %v146_v21 = vmax.f32 %v524_v34, %v548_v56 }
  0x28   :  { %897 = vst [vmem:[#allocation13_spill] sm:$0xff] %v602_v10  ;;  %v155_v23 = vmax.f32 %v527_v38, %v551_v57  ;;  %v164_v24 = vmax.f32 %v530_v42, %v554_v58  ;;  %v173_v25 = vmax.f32 %v533_v46, %v557_v59  ;;  %v120_v27 = vmax.f32 %v119_v17, %v563_v61 }
  0x29   :  { %v129_v28 = vmax.f32 %v128_v19, %v566_v62  ;;  %v138_v29 = vmax.f32 %v137_v20, %v569_v63  ;;  %v182_v31 = vmax.f32 %v536_v50, %v560_v60  ;;  %v147_v32 = vmax.f32 %v146_v21, %v572_v0 }
  0x2a   :  { %v156_v33 = vmax.f32 %v155_v23, %v575_v1  ;;  %v165_v35 = vmax.f32 %v164_v24, %v578_v2  ;;  %v174_v36 = vmax.f32 %v173_v25, %v581_v3  ;;  %v121_v37 = vmax.f32 %v120_v27, %v587_v5 }
  0x2b   :  { %v130_v39 = vmax.f32 %v129_v28, %v590_v6  ;;  %v139_v40 = vmax.f32 %v138_v29, %v593_v7  ;;  %v183_v41 = vmax.f32 %v182_v31, %v584_v4  ;;  %v148_v43 = vmax.f32 %v147_v32, %v596_v8 }
  0x2c   :  { %v157_v44 = vmax.f32 %v156_v33, %v599_v9  ;;  %v166_v45 = vmax.f32 %v165_v35, %v602_v10  ;;  %v175_v47 = vmax.f32 %v174_v36, %v605_v15  ;;  %v122_v48 = vrot.slane %v121_v37, 4 }
  0x2d   :  { %v131_v49 = vrot.slane %v130_v39, 4  ;;  %v140_v51 = vrot.slane %v139_v40, 4  ;;  %v184_v52 = vmax.f32 %v183_v41, %v608_v16  ;;  %v149_v17 = vrot.slane %v148_v43, 4 }
  0x2e   :  { %v158_v19 = vrot.slane %v157_v44, 4  ;;  %v167_v20 = vrot.slane %v166_v45, 4  ;;  %v176_v21 = vrot.slane %v175_v47, 4  ;;  %v123_v23 = vmax.f32 %v121_v37, %v122_v48 }
  0x2f   :  { %v132_v24 = vmax.f32 %v130_v39, %v131_v49  ;;  %v141_v25 = vmax.f32 %v139_v40, %v140_v51  ;;  %v185_v27 = vrot.slane %v184_v52, 4  ;;  %v150_v28 = vmax.f32 %v148_v43, %v149_v17 }
  0x30   :  { %v159_v29 = vmax.f32 %v157_v44, %v158_v19  ;;  %v168_v31 = vmax.f32 %v166_v45, %v167_v20  ;;  %v177_v32 = vmax.f32 %v175_v47, %v176_v21  ;;  %v124_v33 = vrot.slane %v123_v23, 2 }
  0x31   :  { %v133_v35 = vrot.slane %v132_v24, 2  ;;  %v142_v36 = vrot.slane %v141_v25, 2  ;;  %v186_v14 = vmax.f32 %v184_v52, %v185_v27  ;;  %v151_v18 = vrot.slane %v150_v28, 2 }
  0x32   :  { %v160_v13 = vrot.slane %v159_v29, 2  ;;  %v169_v12 = vrot.slane %v168_v31, 2  ;;  %v178_v41 = vrot.slane %v177_v32, 2  ;;  %v125_v11 = vmax.f32 %v123_v23, %v124_v33  ;;  %v921_v33 = vld [vmem:[#allocation12_spill] sm:$0xff] }
  0x33   :  { %v134_v16 = vmax.f32 %v132_v24, %v133_v35  ;;  %v143_v15 = vmax.f32 %v141_v25, %v142_v36  ;;  %v187_v10 = vrot.slane %v186_v14, 2  ;;  %v152_v37 = vmax.f32 %v150_v28, %v151_v18 }
  0x34   :  { %v161_v39 = vmax.f32 %v159_v29, %v160_v13  ;;  %v170_v40 = vmax.f32 %v168_v31, %v169_v12  ;;  %v179_v48 = vmax.f32 %v177_v32, %v178_v41  ;;  %v126_v43 = vrot.slane %v125_v11, 1  ;;  %v904_v31 = vld [vmem:[#allocation9_spill] sm:$0xff]  ;;  %v912_v32 = vld [vmem:[#allocation10_spill] sm:$0xff] }
  0x35   :  { %v135_v44 = vrot.slane %v134_v16, 1  ;;  %v144_v45 = vrot.slane %v143_v15, 1  ;;  %v188_v47 = vmax.f32 %v186_v14, %v187_v10  ;;  %v153_v49 = vrot.slane %v152_v37, 1  ;;  %v901_v10 = vld [vmem:[#allocation14_spill] sm:$0xff] }
  0x36   :  { %v162_v51 = vrot.slane %v161_v39, 1  ;;  %v171_v17 = vrot.slane %v170_v40, 1  ;;  %v180_v52 = vrot.slane %v179_v48, 1  ;;  %v642_v19 = vmax.f32 %v125_v11, %v126_v43  ;;  %v900_v11 = vld [vmem:[#allocation13_spill] sm:$0xff] }
  0x37   :  { %v644_v20 = vmax.f32 %v134_v16, %v135_v44  ;;  %v646_v21 = vmax.f32 %v143_v15, %v144_v45  ;;  %v189_v23 = vrot.slane %v188_v47, 1  ;;  %v648_v24 = vmax.f32 %v152_v37, %v153_v49  ;;  %v902_v15 = vld [vmem:[#allocation15_spill] sm:$0xff]  ;;  %v903_v16 = vld [vmem:[#allocation8_spill] sm:$0xff] }
  0x38   :  { %v650_v13 = vmax.f32 %v161_v39, %v162_v51  ;;  %v652_v12 = vmax.f32 %v170_v40, %v171_v17  ;;  %v654_v18 = vmax.f32 %v179_v48, %v180_v52  ;;  %vm200_vm12 = vcmp.eq.f32.partialorder %v515_v22, %v642_v19 }
  0x39   :  { %v656_v14 = vmax.f32 %v188_v47, %v189_v23  ;;  %vm201_vm15 = vcmp.eq.f32.partialorder %v518_v26, %v644_v20  ;;  %vm202_vm1 = vcmp.eq.f32.partialorder %v521_v30, %v646_v21  ;;  %vm203_vm3 = vcmp.eq.f32.partialorder %v524_v34, %v648_v24 }
  0x3a   :  { %vm204_vm4 = vcmp.eq.f32.partialorder %v527_v38, %v650_v13  ;;  %vm205_vm5 = vcmp.eq.f32.partialorder %v530_v42, %v652_v12  ;;  %vm206_vm6 = vcmp.eq.f32.partialorder %v533_v46, %v654_v18  ;;  %vm208_vm8 = vcmp.eq.f32.partialorder %v539_v53, %v642_v19 }
  0x3b   :  { %vm207_vm7 = vcmp.eq.f32.partialorder %v536_v50, %v656_v14  ;;  %vm225_vm2 = vcmp.eq.f32.partialorder %v590_v6, %v644_v20  ;;  %vm226_vm13 = vcmp.eq.f32.partialorder %v593_v7, %v646_v21  ;;  %vm227_vm11 = vcmp.eq.f32.partialorder %v596_v8, %v648_v24 }
  0x3c   :  { %vm228_vm0 = vcmp.eq.f32.partialorder %v599_v9, %v650_v13  ;;  %vm229_vm14 = vcmp.eq.f32.partialorder %v900_v11, %v652_v12  ;;  %vm230_vm9 = vcmp.eq.f32.partialorder %v901_v10, %v654_v18  ;;  %vm231_vm10 = vcmp.eq.f32.partialorder %v902_v15, %v656_v14 }
  0x3d   :  { %v232_v25 = vsel %vm200_vm12, %v903_v16, 32.0  ;;  %v233_v27 = vsel %vm201_vm15, %v903_v16, 32.0  ;;  %v234_v28 = vsel %vm202_vm1, %v903_v16, 32.0  ;;  %v235_v29 = vsel %vm203_vm3, %v903_v16, 32.0 }
  0x3e   :  { %v236_v22 = vsel %vm204_vm4, %v903_v16, 32.0  ;;  %v237_v26 = vsel %vm205_vm5, %v903_v16, 32.0  ;;  %v238_v30 = vsel %vm206_vm6, %v903_v16, 32.0  ;;  %v239_v34 = vsel %vm207_vm7, %v903_v16, 32.0 }
  0x3f   :  { %v240_v38 = vsel %vm208_vm8, %v904_v31, 32.0  ;;  %vm905_vm12 = vcmp.eq.f32.partialorder %v542_v54, %v644_v20  ;;  %vm906_vm15 = vcmp.eq.f32.partialorder %v545_v55, %v646_v21  ;;  %vm907_vm1 = vcmp.eq.f32.partialorder %v548_v56, %v648_v24 }
  0x40   :  { %v241_v42 = vsel %vm905_vm12, %v904_v31, 32.0  ;;  %v242_v46 = vsel %vm906_vm15, %v904_v31, 32.0  ;;  %v243_v50 = vsel %vm907_vm1, %v904_v31, 32.0  ;;  %vm908_vm3 = vcmp.eq.f32.partialorder %v551_v57, %v650_v13 }
  0x41   :  { %v244_v53 = vsel %vm908_vm3, %v904_v31, 32.0  ;;  %vm909_vm4 = vcmp.eq.f32.partialorder %v554_v58, %v652_v12  ;;  %vm910_vm5 = vcmp.eq.f32.partialorder %v557_v59, %v654_v18  ;;  %vm911_vm6 = vcmp.eq.f32.partialorder %v560_v60, %v656_v14 }
  0x42   :  { %v245_v54 = vsel %vm909_vm4, %v904_v31, 32.0  ;;  %v246_v55 = vsel %vm910_vm5, %v904_v31, 32.0  ;;  %v247_v56 = vsel %vm911_vm6, %v904_v31, 32.0  ;;  %vm913_vm7 = vcmp.eq.f32.partialorder %v563_v61, %v642_v19 }
  0x43   :  { %v248_v57 = vsel %vm913_vm7, %v912_v32, 32.0  ;;  %vm914_vm8 = vcmp.eq.f32.partialorder %v566_v62, %v644_v20  ;;  %vm915_vm12 = vcmp.eq.f32.partialorder %v569_v63, %v646_v21  ;;  %vm916_vm15 = vcmp.eq.f32.partialorder %v572_v0, %v648_v24 }
  0x44   :  { %v249_v58 = vsel %vm914_vm8, %v912_v32, 32.0  ;;  %v250_v59 = vsel %vm915_vm12, %v912_v32, 32.0  ;;  %v251_v60 = vsel %vm916_vm15, %v912_v32, 32.0  ;;  %vm917_vm1 = vcmp.eq.f32.partialorder %v575_v1, %v650_v13 }
  0x45   :  { %v252_v61 = vsel %vm917_vm1, %v912_v32, 32.0  ;;  %vm918_vm3 = vcmp.eq.f32.partialorder %v578_v2, %v652_v12  ;;  %vm919_vm4 = vcmp.eq.f32.partialorder %v581_v3, %v654_v18  ;;  %vm920_vm5 = vcmp.eq.f32.partialorder %v584_v4, %v656_v14 }
  0x46   :  { %v253_v62 = vsel %vm918_vm3, %v912_v32, 32.0  ;;  %v254_v63 = vsel %vm919_vm4, %v912_v32, 32.0  ;;  %v255_v0 = vsel %vm920_vm5, %v912_v32, 32.0  ;;  %vm922_vm6 = vcmp.eq.f32.partialorder %v587_v5, %v642_v19 }
  0x47   :  { %v256_v1 = vsel %vm922_vm6, %v921_v33, 32.0  ;;  %v257_v2 = vsel %vm225_vm2, %v921_v33, 32.0  ;;  %v258_v3 = vsel %vm226_vm13, %v921_v33, 32.0  ;;  %v259_v4 = vsel %vm227_vm11, %v921_v33, 32.0 }
  0x48   :  { %v260_v5 = vsel %vm228_vm0, %v921_v33, 32.0  ;;  %v261_v6 = vsel %vm229_vm14, %v921_v33, 32.0  ;;  %v262_v7 = vsel %vm230_vm9, %v921_v33, 32.0  ;;  %v263_v8 = vsel %vm231_vm10, %v921_v33, 32.0 }
  0x49   :  { %v264_v35 = vmin.f32 %v232_v25, %v240_v38  ;;  %v273_v36 = vmin.f32 %v233_v27, %v241_v42  ;;  %v282_v41 = vmin.f32 %v234_v28, %v242_v46  ;;  %v291_v9 = vmin.f32 %v235_v29, %v243_v50 }
  0x4a   :  { %v300_v37 = vmin.f32 %v236_v22, %v244_v53  ;;  %v309_v39 = vmin.f32 %v237_v26, %v245_v54  ;;  %v318_v40 = vmin.f32 %v238_v30, %v246_v55  ;;  %v327_v45 = vmin.f32 %v239_v34, %v247_v56 }
  0x4b   :  { %v265_v48 = vmin.f32 %v264_v35, %v248_v57  ;;  %v274_v43 = vmin.f32 %v273_v36, %v249_v58  ;;  %v283_v44 = vmin.f32 %v282_v41, %v250_v59  ;;  %v292_v47 = vmin.f32 %v291_v9, %v251_v60 }
  0x4c   :  { %v301_v49 = vmin.f32 %v300_v37, %v252_v61  ;;  %v310_v51 = vmin.f32 %v309_v39, %v253_v62  ;;  %v319_v17 = vmin.f32 %v318_v40, %v254_v63  ;;  %v328_v21 = vmin.f32 %v327_v45, %v255_v0 }
  0x4d   :  { %v266_v52 = vmin.f32 %v265_v48, %v256_v1  ;;  %v275_v19 = vmin.f32 %v274_v43, %v257_v2  ;;  %v284_v20 = vmin.f32 %v283_v44, %v258_v3  ;;  %v293_v23 = vmin.f32 %v292_v47, %v259_v4 }
  0x4e   :  { %v302_v24 = vmin.f32 %v301_v49, %v260_v5  ;;  %v311_v13 = vmin.f32 %v310_v51, %v261_v6  ;;  %v320_v12 = vmin.f32 %v319_v17, %v262_v7  ;;  %v329_v10 = vmin.f32 %v328_v21, %v263_v8 }
  0x4f   :  { %v267_v18 = vrot.slane %v266_v52, 4  ;;  %v276_v14 = vrot.slane %v275_v19, 4  ;;  %v285_v11 = vrot.slane %v284_v20, 4  ;;  %v294_v15 = vrot.slane %v293_v23, 4 }
  0x50   :  { %v303_v16 = vrot.slane %v302_v24, 4  ;;  %v312_v25 = vrot.slane %v311_v13, 4  ;;  %v321_v27 = vrot.slane %v320_v12, 4  ;;  %v330_v26 = vrot.slane %v329_v10, 4 }
  0x51   :  { %v268_v28 = vmin.f32 %v266_v52, %v267_v18  ;;  %v277_v29 = vmin.f32 %v275_v19, %v276_v14  ;;  %v286_v22 = vmin.f32 %v284_v20, %v285_v11  ;;  %v295_v30 = vmin.f32 %v293_v23, %v294_v15 }
  0x52   :  { %v304_v34 = vmin.f32 %v302_v24, %v303_v16  ;;  %v313_v31 = vmin.f32 %v311_v13, %v312_v25  ;;  %v322_v38 = vmin.f32 %v320_v12, %v321_v27  ;;  %v331_v53 = vmin.f32 %v329_v10, %v330_v26  ;;  %v923_v16 = vld [vmem:[#allocation11_spill] sm:$0xff] }
  0x53   :  { %v269_v42 = vrot.slane %v268_v28, 2  ;;  %v278_v46 = vrot.slane %v277_v29, 2  ;;  %v287_v50 = vrot.slane %v286_v22, 2  ;;  %v296_v54 = vrot.slane %v295_v30, 2 }
  0x54   :  { %v305_v55 = vrot.slane %v304_v34, 2  ;;  %v314_v56 = vrot.slane %v313_v31, 2  ;;  %v323_v32 = vrot.slane %v322_v38, 2  ;;  %v332_v60 = vrot.slane %v331_v53, 2 }
  0x55   :  { %v270_v57 = vmin.f32 %v268_v28, %v269_v42  ;;  %v279_v58 = vmin.f32 %v277_v29, %v278_v46  ;;  %v288_v59 = vmin.f32 %v286_v22, %v287_v50  ;;  %v297_v61 = vmin.f32 %v295_v30, %v296_v54 }
  0x56   :  { %v306_v62 = vmin.f32 %v304_v34, %v305_v55  ;;  %v315_v63 = vmin.f32 %v313_v31, %v314_v56  ;;  %v324_v0 = vmin.f32 %v322_v38, %v323_v32  ;;  %v333_v3 = vmin.f32 %v331_v53, %v332_v60 }
  0x57   :  { %v271_v33 = vrot.slane %v270_v57, 1  ;;  %v280_v1 = vrot.slane %v279_v58, 1  ;;  %v289_v2 = vrot.slane %v288_v59, 1  ;;  %v298_v4 = vrot.slane %v297_v61, 1 }
  0x58   :  { %v307_v5 = vrot.slane %v306_v62, 1  ;;  %v316_v6 = vrot.slane %v315_v63, 1  ;;  %v325_v7 = vrot.slane %v324_v0, 1  ;;  %v334_v41 = vrot.slane %v333_v3, 1 }
  0x59   :  { %v272_v8 = vmin.f32 %v270_v57, %v271_v33  ;;  %v281_v35 = vmin.f32 %v279_v58, %v280_v1  ;;  %v290_v36 = vmin.f32 %v288_v59, %v289_v2  ;;  %v299_v9 = vmin.f32 %v297_v61, %v298_v4 }
  0x5a   :  { %v308_v37 = vmin.f32 %v306_v62, %v307_v5  ;;  %v317_v39 = vmin.f32 %v315_v63, %v316_v6  ;;  %v326_v40 = vmin.f32 %v324_v0, %v325_v7  ;;  %v335_v48 = vmin.f32 %v333_v3, %v334_v41 }
  0x5b   :  { %v409_v43 = vtrunc.f32 %v272_v8  ;;  %v411_v44 = vtrunc.f32 %v281_v35  ;;  %v413_v45 = vtrunc.f32 %v290_v36  ;;  %v415_v47 = vtrunc.f32 %v299_v9 }
  0x5c   :  { %v417_v49 = vtrunc.f32 %v308_v37  ;;  %v419_v51 = vtrunc.f32 %v317_v39  ;;  %v421_v17 = vtrunc.f32 %v326_v40  ;;  %v423_v21 = vtrunc.f32 %v335_v48 }
  0x5d   :  { %v410_v52 = vcvt.f32.s32 %v409_v43  ;;  %v412_v19 = vcvt.f32.s32 %v411_v44  ;;  %v414_v20 = vcvt.f32.s32 %v413_v45  ;;  %v416_v23 = vcvt.f32.s32 %v415_v47 }
  0x5e   :  { %v418_v24 = vcvt.f32.s32 %v417_v49  ;;  %v420_v13 = vcvt.f32.s32 %v419_v51  ;;  %v422_v12 = vcvt.f32.s32 %v421_v17  ;;  %v424_v18 = vcvt.f32.s32 %v423_v21 }
  0x5f   :  { %v344_v14 = vcombine.low %v410_v52, %v412_v19  ;;  %v345_v11 = vcombine.low %v414_v20, %v416_v23 }
  0x60   :  { %v346_v10 = vcombine.low %v418_v24, %v420_v13  ;;  %v347_v15 = vcombine.low %v422_v12, %v424_v18 }
  0x61   :  { %v354_v25 = vrot.slane %v344_v14, %v923_v16  ;;  %v361_v27 = vrot.slane %v345_v11, %v923_v16 }
  0x62   :  { %v368_v28 = vrot.slane %v346_v10, %v923_v16  ;;  %v375_v29 = vrot.slane %v347_v15, %v923_v16 }
  0x63   :  { %v376_v22 = vcombine.low %v354_v25, %v361_v27 }
  0x64   :  { %v377_v26 = vcombine.low %v368_v28, %v375_v29 }
  0x65   :  { %v384_v30 = vrot.slane %v376_v22, %v923_v16 }
  0x66   :  { %v391_v34 = vrot.slane %v377_v26, %v923_v16 }
  0x68   :  { %v392_v31 = vcombine.low %v384_v30, %v391_v34 }
  0x6a   :  { %393 = vst [vmem:[#allocation5] sm:$0xff] %v392_v31 }
  0x6b   :  { %463 = shalt.err (!%p460_p12)
}
  0x6c   :  { %s464_s24 = scalar_lea.hbm %s869_s1, 128 }
  0x6d   :  { %p465_p13 = scmp.ne.s32.totalorder %s869_s1, %s464_s24  ;;  %p468_p0 = scmp.lt.u32.totalorder %s464_s24, %s869_s1 }
  0x6f   :  { %p470_p1 = pnand %p468_p0, %p465_p13 }
  0x71   :  { %473 = shalt.err (!%p470_p1)
}
  0x72   :  { %403 = dma.vmem_to_hbm [thread:$0]  %s401_s20, 128, %s869_s1, [#allocation4]  }
  0x73   :  { %476 = dma.done.wait [#allocation4], 128  }
  0x74   :  { %477 = vsyncadd [#allocation4], 4294967168 }
  0x75   :  { %407 = vsyncpa [#allocation3], 1 }
  0x76   :  { %408 = vsyncpa [#allocation4], 1 }

</bundles_post_ra>
